<compile_context>
chip_gen: v6e
topology: v6e:2x2x1
jax: 0.10.0
libtpu: 0.0.40
codegen_flags: <defaults>
</compile_context>

<pallas_src>
import jax
import jax.numpy as jnp
from jax.experimental import pallas as pl
from jax.experimental.pallas import tpu as pltpu

_MIB = 1024 * 1024


# --------------------------------------------------------------------------- #
# Pallas streaming-copy template (identity per-tile "compute")
# --------------------------------------------------------------------------- #
def _copy_kernel(x_ref, o_ref):
    # Per-tile body: pass-through of one VMEM-resident block.  Concrete
    # extractor subclasses would replace this with real per-tile compute.
    o_ref[...] = x_ref[...]


def _tpu_generation() -> str:
    """Best-effort TPU generation detection (used only for tile budgeting)."""
    try:
        kind = jax.devices()[0].device_kind.lower()
    except Exception:  # pragma: no cover - defensive
        return "unknown"
    if "v7" in kind or "7x" in kind:
        return "v7x"
    if "v6" in kind:
        return "v6e"
    if "v5" in kind:
        return "v5e"
    return "unknown"


def _copy_budget(gen: str):
    """(target_block_bytes, vmem_limit_bytes) per generation.

    4 buffers (2x input + 2x output double-buffer) must fit under the limit;
    v7x has only 64 MiB physical VMEM so its limit is capped well below that.
    """
    if gen == "v5e":
        return 3 * _MIB, 32 * _MIB
    if gen == "v6e":
        return 8 * _MIB, 64 * _MIB
    if gen == "v7x":
        return 6 * _MIB, 40 * _MIB
    return 4 * _MIB, 32 * _MIB


def _choose_tiles(rows: int, cols: int, itemsize: int, target_bytes: int):
    """Pick (row_tile, col_tile) so one block is <= target_bytes and layout-legal."""
    sublane = max(8, 32 // max(itemsize, 1))  # 8 for f32, 16 for bf16, 32 for int8
    row_bytes = cols * itemsize

    # Case 1: whole array fits in one comfortable block -> full extent (always legal).
    if rows * row_bytes <= target_bytes:
        return rows, cols

    # Case 2: rows are narrow enough that `sublane` rows at full width fit:
    # tile rows only; last dim stays full-extent (lane-dense when cols%128==0).
    if sublane * row_bytes <= target_bytes:
        r = target_bytes // row_bytes
        row_tile = max(sublane, (r // sublane) * sublane)
        return min(row_tile, rows), cols

    # Case 3: very wide rows.  Tile the lane axis in 128-multiples and keep the
    # row tile at the minimum sublane multiple, so the block can never blow up
    # to 8*row_bytes (review: VMEM OOM risk on all gens, esp. v7x's 64 MiB).
    col_budget = max(1, target_bytes // (sublane * itemsize))
    col_tile = max(128, (col_budget // 128) * 128)
    col_tile = min(col_tile, max(128, (cols // 128) * 128))
    row_tile = min(rows, sublane)
    return row_tile, col_tile


def _lane_dense_2d(flat: jax.Array) -> jax.Array:
    """Metadata-only rewrap to a 128-multiple last dim when possible.

    Lane-dense (unmasked) stores are the biggest single lever for copy-like
    kernels; a non-128-multiple last dim forces masked vst.msk on every store.
    """
    rows, cols = flat.shape
    if cols % 128 == 0:
        return flat
    total = rows * cols
    for w in (65536, 32768, 16384, 8192, 4096, 2048, 1024, 512, 256, 128):
        if total % w == 0:
            return flat.reshape(total // w, w)
    return flat  # odd total: fall back, edge lanes masked


def pallas_identity_copy(flat: jax.Array) -> jax.Array:
    """Tiled, lane-dense HBM->VMEM->HBM streaming pass-through.

    This is the tiling template for concrete extractor subclasses with real
    per-tile compute.  For the identity extractor itself, prefer the
    metadata-only fast path in ExtractorIdentityPallas.forward (no kernel).
    """
    orig_shape = flat.shape
    view = _lane_dense_2d(flat)
    rows, cols = view.shape
    itemsize = jnp.dtype(view.dtype).itemsize

    gen = _tpu_generation()
    target_bytes, vmem_limit = _copy_budget(gen)
    row_tile, col_tile = _choose_tiles(rows, cols, itemsize, target_bytes)

    grid = (pl.cdiv(rows, row_tile), pl.cdiv(cols, col_tile))

    # On v7x, CORE_PARALLEL actually splits the row axis across the two
    # TensorCores (plain "parallel" vs "arbitrary" is measured to change
    # nothing); on single-TC v5e/v6e we keep "parallel".
    if gen == "v7x" and grid[0] >= 2:
        row_sem = pltpu.CORE_PARALLEL
    else:
        row_sem = "parallel"

    out = pl.pallas_call(
        _copy_kernel,
        out_shape=jax.ShapeDtypeStruct((rows, cols), view.dtype),
        grid=grid,
        in_specs=[pl.BlockSpec((row_tile, col_tile), lambda i, j: (i, j))],
        out_specs=pl.BlockSpec((row_tile, col_tile), lambda i, j: (i, j)),
        compiler_params=pltpu.CompilerParams(
            dimension_semantics=(row_sem, "arbitrary"),
            vmem_limit_bytes=vmem_limit,
        ),
    )(view)
    return out.reshape(orig_shape)


# --------------------------------------------------------------------------- #
# Module mirror
# --------------------------------------------------------------------------- #
class ExtractorIdentityPallas:
    """JAX/Pallas mirror of cflearn ExtractorBase (identity forward)."""

    def __init__(self, in_flat_dim: int, num_history: int, *, force_copy: bool = False):
        self.in_flat_dim = in_flat_dim
        self.num_history = num_history
        # force_copy exercises the Pallas streaming template (benchmark /
        # subclass hook); the identity path itself needs no kernel.
        self.force_copy = force_copy

    @property
    def in_dim(self) -> int:
        return self.in_flat_dim // self.num_history

    @property
    def flatten_ts(self) -> bool:
        return True

    @property
    def out_dim(self) -> int:
        # identity extractor: output dim equals the flattened input dim
        return self.in_flat_dim

    def forward(self, net: jax.Array) -> jax.Array:
        # flatten_ts=True: (B, T, D) -> (B, T*D).  Metadata-only reshape.
        batch = net.shape[0]
        flat = net.reshape(batch, self.in_flat_dim)
        if not self.force_copy:
            # Identity path: no kernel.  Launching a copy here would only add
            # a full HBM read + write (2x tensor bytes) for zero compute.
            return flat
        return pallas_identity_copy(flat)

    def __call__(self, net: jax.Array) -> jax.Array:
        return self.forward(net)


if __name__ == "__main__":
    # Small shapes consistent with the module's time-series contract:
    # batch=2, num_history=4, per-step in_dim=32  ->  in_flat_dim=128.
    batch, num_history, step_dim = 2, 4, 32
    in_flat_dim = num_history * step_dim

    key = jax.random.PRNGKey(0)
    net = jax.random.normal(key, (batch, num_history, step_dim), dtype=jnp.float32)
    ref = net.reshape(batch, in_flat_dim)

    extractor = ExtractorIdentityPallas(in_flat_dim=in_flat_dim, num_history=num_history)
    assert extractor.in_dim == step_dim
    assert extractor.out_dim == in_flat_dim
    assert extractor.flatten_ts

    # 1) Default (optimized) identity forward: metadata-only, no kernel launch.
    out_fast = jax.block_until_ready(extractor(net))
    assert out_fast.shape == (batch, extractor.out_dim)
    assert out_fast.dtype == net.dtype
    assert bool(jnp.array_equal(out_fast, ref))

    # 2) Exercise the Pallas streaming-copy template once (bit-exact identity).
    out_kernel = jax.block_until_ready(pallas_identity_copy(ref))
    assert out_kernel.shape == (batch, in_flat_dim)
    assert out_kernel.dtype == ref.dtype
    assert bool(jnp.array_equal(out_kernel, ref))

    print("KERNEL_OK")
</pallas_src>

<mosaic_0001>
module attributes {stable_mosaic.version = 11 : i64} {
  func.func @_copy_kernel(%arg0: i32, %arg1: i32, %arg2: memref<2x128xf32, #tpu.memory_space<vmem>>, %arg3: memref<2x128xf32, #tpu.memory_space<vmem>>) attributes {dimension_semantics = [#tpu.dimension_semantics<parallel>, #tpu.dimension_semantics<arbitrary>], iteration_bounds = array<i64: 1, 1>, scalar_prefetch = 0 : i64, scratch_operands = 0 : i64, tpu.core_type = #tpu.core_type<tc>, window_params = [{transform_indices = @transform_0, window_bounds = array<i64: 2, 128>}, {transform_indices = @transform_1, window_bounds = array<i64: 2, 128>}]} {
    %c0 = arith.constant 0 : index
    %c0_0 = arith.constant 0 : index
    %0 = vector.load %arg2[%c0, %c0_0] : memref<2x128xf32, #tpu.memory_space<vmem>>, vector<2x128xf32>
    %c0_1 = arith.constant 0 : index
    %c0_2 = arith.constant 0 : index
    %1 = vector.load %arg3[%c0_1, %c0_2] : memref<2x128xf32, #tpu.memory_space<vmem>>, vector<2x128xf32>
    tpu.vector_store %arg3[%c0_1, %c0_2], %0 {strides = array<i32>} : memref<2x128xf32, #tpu.memory_space<vmem>>, vector<2x128xf32>,
    return
  }
  func.func @transform_0(%arg0: i32, %arg1: i32) -> (i32, i32) {
    %c0_i32 = arith.constant 0 : i32
    return %arg0, %arg1 : i32, i32
  }
  func.func @transform_1(%arg0: i32, %arg1: i32) -> (i32, i32) {
    %c0_i32 = arith.constant 0 : i32
    return %arg0, %arg1 : i32, i32
  }
}

</mosaic_0001>

<bundles_post_ra>
// kernel: tpu_custom_call.1
= control target key start
LH: loop header
LB: loop body
LE: loop exit
PB: predicated region body
PF: predicated region fallthrough
CT: control target
= control target key end

     0   :  { %6 = vsyncpa [#allocation3], 0  ;;  %s102_s0 = inlined_call_operand.hbm [shape: f32[2,128], index: 0, kind: input, shape index: {}]   ;;  %s103_s1 = inlined_call_operand.hbm [shape: f32[2,128], index: 1, kind: output, shape index: {}]  }
   0x1   :  { %7 = vsyncpa [#allocation4], 0  ;;  %s84_s6 = smov [#allocation2]  }
   0x2   :  { %s14_s7 = sshll.u32 %s84_s6, 4  ;;  %s15_s7 = int_to_ptr.vmem [resolvable:$true] %s14_s7 }
   0x3   :  { %s48_s8 = scalar_lea.vmem %s15_s7, 32  ;;  %p53_p1 = scmp.lt.s32.totalorder %s15_s7, %s15_s7 }
   0x4   :  { %p49_p0 = scmp.ne.s32.totalorder %s15_s7, %s48_s8  ;;  %p54_p2 = scmp.lt.s32.totalorder %s48_s8, %s48_s8 }
   0x6   :  { %p55_p3 = por %p54_p2, %p53_p1 }
   0x8   :  { %p56_p4 = pnand %p55_p3, %p49_p0 }
   0xa   :  { %59 = shalt.err (!%p56_p4)
}
   0xb   :  { %17 = dma.hbm_to_vmem [thread:$0]  %s102_s0, 32, %s15_s7, [#allocation3]  }
   0xc   :  { %80 = dma.done.wait [#allocation3], 32  }
   0xd   :  { %81 = vsyncadd [#allocation3], 4294967264  ;;  %s85_s11 = smov [#allocation5]   ;;  %v21_v0 = vld [vmem:[#allocation2] sm:$0x3] }
   0xe   :  { %s29_s12 = sshll.u32 %s85_s11, 4  ;;  %22 = vst [vmem:[#allocation5] sm:$0x3] %v21_v0  ;;  %s30_s12 = int_to_ptr.vmem [resolvable:$true] %s29_s12 }
   0xf   :  { %s60_s13 = scalar_lea.vmem %s30_s12, 32  ;;  %p65_p6 = scmp.lt.s32.totalorder %s30_s12, %s30_s12 }
  0x10   :  { %p61_p5 = scmp.ne.s32.totalorder %s30_s12, %s60_s13  ;;  %p66_p7 = scmp.lt.s32.totalorder %s60_s13, %s60_s13 }
  0x12   :  { %p67_p8 = por %p66_p7, %p65_p6 }
  0x14   :  { %p68_p9 = pnand %p67_p8, %p61_p5 }
  0x16   :  { %71 = shalt.err (!%p68_p9)
}
  0x17   :  { %32 = dma.vmem_to_hbm [thread:$0]  %s30_s12, 32, %s103_s1, [#allocation4]  }
  0x18   :  { %82 = dma.done.wait [#allocation4], 32  }
  0x19   :  { %83 = vsyncadd [#allocation4], 4294967264 }
  0x1a   :  { %36 = vsyncpa [#allocation3], 1 }
  0x1b   :  { %37 = vsyncpa [#allocation4], 1 }

</bundles_post_ra>
